<compile_context>
chip_gen: v7x
topology: tpu7x:2x2x1
jax: 0.10.0
libtpu: 0.0.40
codegen_flags: <defaults>
</compile_context>

<pallas_src>
import jax
import jax.numpy as jnp
from jax import lax
from jax.experimental import pallas as pl
from jax.experimental.pallas import tpu as pltpu

INPUT_DIM = 4
HIDDEN_DIM = 8
OUTPUT_DIM = 2
LANE = 128
CHUNK = 512  # lanes per in-kernel compute strip (multiple of 128; bounds live vregs)


def _round_up(n: int, m: int) -> int:
    return ((n + m - 1) // m) * m


def _device_kind() -> str:
    try:
        return jax.devices()[0].device_kind.lower()
    except Exception:
        return ""


def _pick_tile(B: int):
    """Pick (TB, n_tiles): TB a multiple of CHUNK (hence of 128), sized per
    TPU generation so per-grid-step DMA dwarfs the ~0.35us pipeline overhead,
    with >=2 tiles on v7x (two TensorCores) when the batch is large enough,
    and padding waste bounded by ~CHUNK per tile (adaptive TB, not Bp->TB)."""
    kind = _device_kind()
    if "v7" in kind:
        tb_target, min_tiles = 49152, 2   # ~3.2 TB/s per TC; keep both TCs fed
    elif "v6" in kind:
        tb_target, min_tiles = 32768, 1   # ~1.3-1.4 TB/s
    elif "v5" in kind:
        tb_target, min_tiles = 16384, 1   # ~0.8 TB/s
    else:
        tb_target, min_tiles = 32768, 1

    if B <= 4 * CHUNK:
        # Small batch: a single tile; splitting only adds per-step overhead.
        return _round_up(max(B, 1), CHUNK), 1

    n_tiles = max(min_tiles, pl.cdiv(B, tb_target))
    TB = _round_up(pl.cdiv(B, n_tiles), CHUNK)
    n_tiles = pl.cdiv(B, TB)  # re-derive after rounding TB up
    return TB, n_tiles


def mlp_kernel(xT_ref, w1_ref, b1_ref, w2_ref, oT_ref):
    # xT_ref : (4, TB)   batch on lanes (input dtype preserved through DMA)
    # w1_ref : (8, 4)    PyTorch (out, in) layout, VMEM-resident
    # b1_ref : (8, 1)
    # w2_ref : (2, 8)
    # oT_ref : (2, TB)
    w1 = w1_ref[...].astype(jnp.float32)
    b1 = b1_ref[...].astype(jnp.float32)
    w2 = w2_ref[...].astype(jnp.float32)

    tb = xT_ref.shape[-1]
    assert tb % CHUNK == 0, "TB must be a multiple of CHUNK"
    n_chunks = tb // CHUNK  # static

    # Hoist loop-invariant broadcasts/slices out of the chunk loop
    # (JAX does not CSE broadcast_in_dim).
    b1_b = jnp.broadcast_to(b1, (HIDDEN_DIM, CHUNK))
    w1_cols = [w1[:, k:k + 1] for k in range(INPUT_DIM)]
    w2_cols = [w2[:, j:j + 1] for j in range(HIDDEN_DIM)]

    def chunk_body(c, carry):
        start = pl.multiple_of(c * CHUNK, CHUNK)
        xT = xT_ref[:, pl.ds(start, CHUNK)].astype(jnp.float32)   # (4, CHUNK)

        # fc1: h[j, b] = sum_k W1[j, k] * x[k, b] + b1[j]   (unrolled VPU FMAs)
        h = b1_b
        for k in range(INPUT_DIM):
            h = h + w1_cols[k] * xT[k:k + 1, :]
        h = jnp.maximum(h, 0.0)

        # fc2 (no bias): out[i, b] = sum_j W2[i, j] * h[j, b]
        out = w2_cols[0] * h[0:1, :]
        for j in range(1, HIDDEN_DIM):
            out = out + w2_cols[j] * h[j:j + 1, :]

        oT_ref[:, pl.ds(start, CHUNK)] = out.astype(oT_ref.dtype)
        return carry

    # Strip-mine the big DMA block: keeps live vregs ~constant (no spills)
    # while the HBM<->VMEM traffic still moves one large tile per grid step.
    lax.fori_loop(0, n_chunks, chunk_body, 0)


def neural_network_forward(x, w1, b1, w2):
    """x: (B, 4); w1: (8, 4) PyTorch layout; b1: (8,); w2: (2, 8) PyTorch layout.

    Returns (B, 2), matching `fc2(relu(fc1(x)))`.
    """
    B = x.shape[0]
    TB, n_tiles = _pick_tile(B)
    assert TB % LANE == 0 and TB % CHUNK == 0, "tile must respect 128-lane tiling"
    Bp = TB * n_tiles

    # Layout glue (plain XLA): batch onto lanes; keep x's dtype (bf16 passes
    # straight through the DMA and is upcast per-chunk in-kernel); padding is
    # only the bounded adaptive remainder.
    xT = jnp.pad(x.T, ((0, 0), (0, Bp - B)))          # (4, Bp)
    b1_2d = b1.reshape(HIDDEN_DIM, 1)
    out_dtype = jnp.result_type(x.dtype, w1.dtype)

    oT = pl.pallas_call(
        mlp_kernel,
        out_shape=jax.ShapeDtypeStruct((OUTPUT_DIM, Bp), out_dtype),
        grid=(n_tiles,),
        in_specs=[
            pl.BlockSpec((INPUT_DIM, TB), lambda i: (0, i)),          # activations, tiled over batch
            pl.BlockSpec((HIDDEN_DIM, INPUT_DIM), lambda i: (0, 0)),  # weights VMEM-resident
            pl.BlockSpec((HIDDEN_DIM, 1), lambda i: (0, 0)),
            pl.BlockSpec((OUTPUT_DIM, HIDDEN_DIM), lambda i: (0, 0)),
        ],
        out_specs=pl.BlockSpec((OUTPUT_DIM, TB), lambda i: (0, i)),
        compiler_params=pltpu.CompilerParams(
            dimension_semantics=("parallel",),       # batch tiles shard across TCs (v7x)
            vmem_limit_bytes=32 * 1024 * 1024,       # ~6 MiB needed at TB=48K; generous headroom
        ),
    )(xT, w1, b1_2d, w2)

    # Slice away batch padding BEFORE the transpose back to (B, out_features).
    return oT[:, :B].T


def reference_forward(x, w1, b1, w2):
    h = jnp.maximum(x.astype(jnp.float32) @ w1.T + b1, 0.0)
    return h @ w2.T


if __name__ == "__main__":
    key = jax.random.PRNGKey(0)
    kx, kw1, kb1, kw2 = jax.random.split(key, 4)

    B = 8  # small batch, consistent with the module's (B, 4) input
    x = jax.random.normal(kx, (B, INPUT_DIM), dtype=jnp.float32)

    # Deterministic parameters in PyTorch Linear layout: (out_features, in_features)
    w1 = jax.random.uniform(kw1, (HIDDEN_DIM, INPUT_DIM), jnp.float32, -0.5, 0.5)
    b1 = jax.random.uniform(kb1, (HIDDEN_DIM,), jnp.float32, -0.5, 0.5)
    w2 = jax.random.uniform(kw2, (OUTPUT_DIM, HIDDEN_DIM), jnp.float32, -0.35, 0.35)

    out = neural_network_forward(x, w1, b1, w2)
    jax.block_until_ready(out)

    ref = reference_forward(x, w1, b1, w2)
    assert out.shape == (B, OUTPUT_DIM)
    assert jnp.allclose(out, ref, atol=1e-5, rtol=1e-5), "mismatch vs reference"

    print("KERNEL_OK")
</pallas_src>

<mosaic_0001>
module attributes {stable_mosaic.version = 11 : i64} {
  func.func @mlp_kernel(%arg0: i32, %arg1: memref<4x512xf32, #tpu.memory_space<vmem>>, %arg2: memref<8x4xf32, #tpu.memory_space<vmem>>, %arg3: memref<8x1xf32, #tpu.memory_space<vmem>>, %arg4: memref<2x8xf32, #tpu.memory_space<vmem>>, %arg5: memref<2x512xf32, #tpu.memory_space<vmem>>) attributes {dimension_semantics = [#tpu.dimension_semantics<parallel>], iteration_bounds = array<i64: 1>, scalar_prefetch = 0 : i64, scratch_operands = 0 : i64, tpu.core_type = #tpu.core_type<tc>, window_params = [{transform_indices = @transform_0, window_bounds = array<i64: 4, 512>}, {pipeline_mode = #tpu.pipeline_mode<synchronous>, transform_indices = @transform_1, window_bounds = array<i64: 8, 4>}, {pipeline_mode = #tpu.pipeline_mode<synchronous>, transform_indices = @transform_2, window_bounds = array<i64: 8, 1>}, {pipeline_mode = #tpu.pipeline_mode<synchronous>, transform_indices = @transform_3, window_bounds = array<i64: 2, 8>}, {transform_indices = @transform_4, window_bounds = array<i64: 2, 512>}]} {
    %c0 = arith.constant 0 : index
    %c0_0 = arith.constant 0 : index
    %0 = vector.load %arg2[%c0, %c0_0] : memref<8x4xf32, #tpu.memory_space<vmem>>, vector<8x4xf32>
    %c0_1 = arith.constant 0 : index
    %c0_2 = arith.constant 0 : index
    %1 = vector.load %arg3[%c0_1, %c0_2] : memref<8x1xf32, #tpu.memory_space<vmem>>, vector<8x1xf32>
    %c0_3 = arith.constant 0 : index
    %c0_4 = arith.constant 0 : index
    %2 = vector.load %arg4[%c0_3, %c0_4] : memref<2x8xf32, #tpu.memory_space<vmem>>, vector<2x8xf32>
    %3 = vector.shape_cast %1 : vector<8x1xf32> to vector<8x1xf32>
    %4 = vector.broadcast %3 : vector<8x1xf32> to vector<8x512xf32>
    %5 = vector.extract_strided_slice %0 {offsets = [0, 0], sizes = [8, 1], strides = [1, 1]} : vector<8x4xf32> to vector<8x1xf32>
    %6 = vector.extract_strided_slice %0 {offsets = [0, 1], sizes = [8, 1], strides = [1, 1]} : vector<8x4xf32> to vector<8x1xf32>
    %7 = vector.extract_strided_slice %0 {offsets = [0, 2], sizes = [8, 1], strides = [1, 1]} : vector<8x4xf32> to vector<8x1xf32>
    %8 = vector.extract_strided_slice %0 {offsets = [0, 3], sizes = [8, 1], strides = [1, 1]} : vector<8x4xf32> to vector<8x1xf32>
    %9 = vector.extract_strided_slice %2 {offsets = [0, 0], sizes = [2, 1], strides = [1, 1]} : vector<2x8xf32> to vector<2x1xf32>
    %10 = vector.extract_strided_slice %2 {offsets = [0, 1], sizes = [2, 1], strides = [1, 1]} : vector<2x8xf32> to vector<2x1xf32>
    %11 = vector.extract_strided_slice %2 {offsets = [0, 2], sizes = [2, 1], strides = [1, 1]} : vector<2x8xf32> to vector<2x1xf32>
    %12 = vector.extract_strided_slice %2 {offsets = [0, 3], sizes = [2, 1], strides = [1, 1]} : vector<2x8xf32> to vector<2x1xf32>
    %13 = vector.extract_strided_slice %2 {offsets = [0, 4], sizes = [2, 1], strides = [1, 1]} : vector<2x8xf32> to vector<2x1xf32>
    %14 = vector.extract_strided_slice %2 {offsets = [0, 5], sizes = [2, 1], strides = [1, 1]} : vector<2x8xf32> to vector<2x1xf32>
    %15 = vector.extract_strided_slice %2 {offsets = [0, 6], sizes = [2, 1], strides = [1, 1]} : vector<2x8xf32> to vector<2x1xf32>
    %16 = vector.extract_strided_slice %2 {offsets = [0, 7], sizes = [2, 1], strides = [1, 1]} : vector<2x8xf32> to vector<2x1xf32>
    %c0_i32 = arith.constant 0 : i32
    %c512_i32 = arith.constant 512 : i32
    %17 = arith.muli %c0_i32, %c512_i32 : i32
    %18 = tpu.assume_multiple %17, 512 : i32
    %c0_5 = arith.constant 0 : index
    %19 = arith.index_cast %18 : i32 to index
    %20 = vector.load %arg1[%c0_5, %19] : memref<4x512xf32, #tpu.memory_space<vmem>>, vector<4x512xf32>
    %21 = vector.extract_strided_slice %20 {offsets = [0, 0], sizes = [1, 512], strides = [1, 1]} : vector<4x512xf32> to vector<1x512xf32>
    %22 = vector.broadcast %5 : vector<8x1xf32> to vector<8x512xf32>
    %23 = vector.broadcast %21 : vector<1x512xf32> to vector<8x512xf32>
    %24 = arith.mulf %22, %23 : vector<8x512xf32>
    %25 = arith.addf %4, %24 : vector<8x512xf32>
    %26 = vector.extract_strided_slice %20 {offsets = [1, 0], sizes = [1, 512], strides = [1, 1]} : vector<4x512xf32> to vector<1x512xf32>
    %27 = vector.broadcast %6 : vector<8x1xf32> to vector<8x512xf32>
    %28 = vector.broadcast %26 : vector<1x512xf32> to vector<8x512xf32>
    %29 = arith.mulf %27, %28 : vector<8x512xf32>
    %30 = arith.addf %25, %29 : vector<8x512xf32>
    %31 = vector.extract_strided_slice %20 {offsets = [2, 0], sizes = [1, 512], strides = [1, 1]} : vector<4x512xf32> to vector<1x512xf32>
    %32 = vector.broadcast %7 : vector<8x1xf32> to vector<8x512xf32>
    %33 = vector.broadcast %31 : vector<1x512xf32> to vector<8x512xf32>
    %34 = arith.mulf %32, %33 : vector<8x512xf32>
    %35 = arith.addf %30, %34 : vector<8x512xf32>
    %36 = vector.extract_strided_slice %20 {offsets = [3, 0], sizes = [1, 512], strides = [1, 1]} : vector<4x512xf32> to vector<1x512xf32>
    %37 = vector.broadcast %8 : vector<8x1xf32> to vector<8x512xf32>
    %38 = vector.broadcast %36 : vector<1x512xf32> to vector<8x512xf32>
    %39 = arith.mulf %37, %38 : vector<8x512xf32>
    %40 = arith.addf %35, %39 : vector<8x512xf32>
    %cst = arith.constant 0.000000e+00 : f32
    %41 = vector.broadcast %cst : f32 to vector<8x512xf32>
    %42 = arith.maximumf %40, %41 : vector<8x512xf32>
    %43 = vector.extract_strided_slice %42 {offsets = [0, 0], sizes = [1, 512], strides = [1, 1]} : vector<8x512xf32> to vector<1x512xf32>
    %44 = vector.broadcast %9 : vector<2x1xf32> to vector<2x512xf32>
    %45 = vector.broadcast %43 : vector<1x512xf32> to vector<2x512xf32>
    %46 = arith.mulf %44, %45 : vector<2x512xf32>
    %47 = vector.extract_strided_slice %42 {offsets = [1, 0], sizes = [1, 512], strides = [1, 1]} : vector<8x512xf32> to vector<1x512xf32>
    %48 = vector.broadcast %10 : vector<2x1xf32> to vector<2x512xf32>
    %49 = vector.broadcast %47 : vector<1x512xf32> to vector<2x512xf32>
    %50 = arith.mulf %48, %49 : vector<2x512xf32>
    %51 = arith.addf %46, %50 : vector<2x512xf32>
    %52 = vector.extract_strided_slice %42 {offsets = [2, 0], sizes = [1, 512], strides = [1, 1]} : vector<8x512xf32> to vector<1x512xf32>
    %53 = vector.broadcast %11 : vector<2x1xf32> to vector<2x512xf32>
    %54 = vector.broadcast %52 : vector<1x512xf32> to vector<2x512xf32>
    %55 = arith.mulf %53, %54 : vector<2x512xf32>
    %56 = arith.addf %51, %55 : vector<2x512xf32>
    %57 = vector.extract_strided_slice %42 {offsets = [3, 0], sizes = [1, 512], strides = [1, 1]} : vector<8x512xf32> to vector<1x512xf32>
    %58 = vector.broadcast %12 : vector<2x1xf32> to vector<2x512xf32>
    %59 = vector.broadcast %57 : vector<1x512xf32> to vector<2x512xf32>
    %60 = arith.mulf %58, %59 : vector<2x512xf32>
    %61 = arith.addf %56, %60 : vector<2x512xf32>
    %62 = vector.extract_strided_slice %42 {offsets = [4, 0], sizes = [1, 512], strides = [1, 1]} : vector<8x512xf32> to vector<1x512xf32>
    %63 = vector.broadcast %13 : vector<2x1xf32> to vector<2x512xf32>
    %64 = vector.broadcast %62 : vector<1x512xf32> to vector<2x512xf32>
    %65 = arith.mulf %63, %64 : vector<2x512xf32>
    %66 = arith.addf %61, %65 : vector<2x512xf32>
    %67 = vector.extract_strided_slice %42 {offsets = [5, 0], sizes = [1, 512], strides = [1, 1]} : vector<8x512xf32> to vector<1x512xf32>
    %68 = vector.broadcast %14 : vector<2x1xf32> to vector<2x512xf32>
    %69 = vector.broadcast %67 : vector<1x512xf32> to vector<2x512xf32>
    %70 = arith.mulf %68, %69 : vector<2x512xf32>
    %71 = arith.addf %66, %70 : vector<2x512xf32>
    %72 = vector.extract_strided_slice %42 {offsets = [6, 0], sizes = [1, 512], strides = [1, 1]} : vector<8x512xf32> to vector<1x512xf32>
    %73 = vector.broadcast %15 : vector<2x1xf32> to vector<2x512xf32>
    %74 = vector.broadcast %72 : vector<1x512xf32> to vector<2x512xf32>
    %75 = arith.mulf %73, %74 : vector<2x512xf32>
    %76 = arith.addf %71, %75 : vector<2x512xf32>
    %77 = vector.extract_strided_slice %42 {offsets = [7, 0], sizes = [1, 512], strides = [1, 1]} : vector<8x512xf32> to vector<1x512xf32>
    %78 = vector.broadcast %16 : vector<2x1xf32> to vector<2x512xf32>
    %79 = vector.broadcast %77 : vector<1x512xf32> to vector<2x512xf32>
    %80 = arith.mulf %78, %79 : vector<2x512xf32>
    %81 = arith.addf %76, %80 : vector<2x512xf32>
    %c0_6 = arith.constant 0 : index
    %82 = arith.index_cast %18 : i32 to index
    %83 = vector.load %arg5[%c0_6, %82] : memref<2x512xf32, #tpu.memory_space<vmem>>, vector<2x512xf32>
    tpu.vector_store %arg5[%c0_6, %82], %81 {strides = array<i32>} : memref<2x512xf32, #tpu.memory_space<vmem>>, vector<2x512xf32>,
    %c1_i32 = arith.constant 1 : i32
    return
  }
  func.func @transform_0(%arg0: i32) -> (i32, i32) {
    %c0_i32 = arith.constant 0 : i32
    %c0_i32_0 = arith.constant 0 : i32
    return %c0_i32, %arg0 : i32, i32
  }
  func.func @transform_1(%arg0: i32) -> (i32, i32) {
    %c0_i32 = arith.constant 0 : i32
    %c0_i32_0 = arith.constant 0 : i32
    %c0_i32_1 = arith.constant 0 : i32
    return %c0_i32, %c0_i32_0 : i32, i32
  }
  func.func @transform_2(%arg0: i32) -> (i32, i32) {
    %c0_i32 = arith.constant 0 : i32
    %c0_i32_0 = arith.constant 0 : i32
    %c0_i32_1 = arith.constant 0 : i32
    return %c0_i32, %c0_i32_0 : i32, i32
  }
  func.func @transform_3(%arg0: i32) -> (i32, i32) {
    %c0_i32 = arith.constant 0 : i32
    %c0_i32_0 = arith.constant 0 : i32
    %c0_i32_1 = arith.constant 0 : i32
    return %c0_i32, %c0_i32_0 : i32, i32
  }
  func.func @transform_4(%arg0: i32) -> (i32, i32) {
    %c0_i32 = arith.constant 0 : i32
    %c0_i32_0 = arith.constant 0 : i32
    return %c0_i32, %arg0 : i32, i32
  }
}

</mosaic_0001>

<bundles_post_ra>
// kernel: tpu_custom_call.1
= control target key start
LH: loop header
LB: loop body
LE: loop exit
PB: predicated region body
PF: predicated region fallthrough
CT: control target
= control target key end

     0   :  { %v532_v1 = vmov 1   ;;  %v533_v2 = vmov 0   ;;  %s730_s0 = inlined_call_operand.vmem [shape: f32[4,512], index: 0, kind: input, shape index: {}]   ;;  %s731_s1 = inlined_call_operand.vmem [shape: f32[8,4], index: 1, kind: input, shape index: {}]   ;;  %s732_s2 = inlined_call_operand.vmem [shape: f32[8,1], index: 2, kind: input, shape index: {}]   ;;  %s733_s3 = inlined_call_operand.vmem [shape: f32[2,8], index: 3, kind: input, shape index: {}]   ;;  %s734_s4 = inlined_call_operand.hbm [shape: f32[2,512], index: 4, kind: output, shape index: {}]  }
   0x1   :  { %v18_v0 = vld [vmem:[%s731_s1] sm:$0xff]  ;;  %496 = vset.pattern.permute.xlu1 %v532_v1  ;;  %495 = vset.pattern.permute.xlu0 %v533_v2 }
   0x2   :  { %80 = vperm.xlu1 %496, %v18_v0   ;;  %30 = vperm.xlu0 %495, %v18_v0  }
   0x3   :  { %9 = vsyncpa [#allocation3], 0  ;;  %v19_v3 = vld [vmem:[%s732_s2] sm:$0xff]  ;;  %v534_v4 = vmov 2   ;;  %v535_v6 = vmov 3   ;;  %v536_v7 = vmov 5   ;;  %v35_v11 = vlaneseq }
   0x4   :  { %v20_v5 = vld [vmem:[%s733_s3] sm:$0x3]  ;;  %v537_v8 = vmov 7   ;;  %v538_v9 = vmov 4   ;;  %v539_v10 = vmov 6   ;;  %v27_v18 = vld [vmem:[%s730_s0 + $0x8] sm:$0xff] }
   0x5   :  { %v576_v12 = vshrl.u32 %v35_v11, 7  ;;  %v26_v17 = vld [vmem:[%s730_s0] sm:$0xff]  ;;  %s541_s0 = smov [#allocation2]  }
   0x6   :  { %497 = vset.pattern.permute.xlu1 %v534_v4  ;;  %23 = vperm.xlu0 %495, %v19_v3   ;;  %s477_s22 = sshll.u32 %s541_s0, 4  ;;  %s478_s22 = int_to_ptr.vmem [resolvable:$true] %s477_s22 }
   0x7   :  { %128 = vperm.xlu1 %497, %v18_v0   ;;  %v579_v13 = vsub.s32 0, %v576_v12  ;;  %v582_v14 = vsub.s32 4, %v576_v12  ;;  %v585_v15 = vsub.s32 1, %v576_v12  ;;  %v588_v16 = vsub.s32 5, %v576_v12  ;;  %s508_s23 = scalar_lea.vmem %s478_s22, 128  ;;  %p513_p1 = scmp.lt.s32.totalorder %s478_s22, %s478_s22 }
   0x8   :  { %v597_v19 = vsub.s32 2, %v576_v12  ;;  %v600_v20 = vsub.s32 6, %v576_v12  ;;  %v607_v25 = vsub.s32 3, %v576_v12  ;;  %v610_v26 = vsub.s32 7, %v576_v12  ;;  %p509_p0 = scmp.ne.s32.totalorder %s478_s22, %s508_s23  ;;  %p514_p2 = scmp.lt.s32.totalorder %s508_s23, %s508_s23 }
   0x9   :  { %v38_v21 = vrot.slane %v26_v17, %v579_v13  ;;  %v42_v22 = vrot.slane %v26_v17, %v582_v14  ;;  %v46_v23 = vrot.slane %v27_v18, %v579_v13  ;;  %v50_v24 = vrot.slane %v27_v18, %v582_v14 }
   0xa   :  { %498 = vset.pattern.permute.xlu0 %v535_v6  ;;  %v86_v27 = vrot.slane %v26_v17, %v585_v15  ;;  %v90_v28 = vrot.slane %v26_v17, %v588_v16  ;;  %v94_v29 = vrot.slane %v27_v18, %v585_v15  ;;  %v98_v30 = vrot.slane %v27_v18, %v588_v16  ;;  %p515_p3 = por %p514_p2, %p513_p1 }
   0xb   :  { %499 = vset.pattern.permute.xlu1 %v533_v2  ;;  %176 = vperm.xlu0 %498, %v18_v0   ;;  %v134_v31 = vrot.slane %v26_v17, %v597_v19  ;;  %v138_v32 = vrot.slane %v26_v17, %v600_v20  ;;  %v142_v33 = vrot.slane %v27_v18, %v597_v19 }
   0xc   :  { %229 = vperm.xlu1 %499, %v20_v5   ;;  %v146_v34 = vrot.slane %v27_v18, %v600_v20  ;;  %v58_v35 = vrot.slane %v38_v21, %v579_v13  ;;  %v62_v36 = vrot.slane %v42_v22, %v579_v13  ;;  %v66_v37 = vrot.slane %v46_v23, %v579_v13  ;;  %p516_p4 = pnand %p515_p3, %p509_p0 }
   0xd   :  { %v70_v38 = vrot.slane %v50_v24, %v579_v13  ;;  %v182_v39 = vrot.slane %v26_v17, %v607_v25  ;;  %v186_v40 = vrot.slane %v26_v17, %v610_v26  ;;  %v190_v41 = vrot.slane %v27_v18, %v607_v25 }
   0xe   :  { %v194_v42 = vrot.slane %v27_v18, %v610_v26  ;;  %v106_v43 = vrot.slane %v86_v27, %v585_v15  ;;  %v110_v44 = vrot.slane %v90_v28, %v585_v15  ;;  %v114_v45 = vrot.slane %v94_v29, %v585_v15 }
   0xf   :  { %501 = vset.pattern.permute.xlu0 %v534_v4  ;;  %v118_v46 = vrot.slane %v98_v30, %v585_v15  ;;  %v154_v49 = vrot.slane %v134_v31, %v597_v19  ;;  %v158_v50 = vrot.slane %v138_v32, %v597_v19  ;;  %v162_v51 = vrot.slane %v142_v33, %v597_v19 }
  0x10   :  { %500 = vset.pattern.permute.xlu1 %v532_v1  ;;  %281 = vperm.xlu0 %501, %v20_v5   ;;  %v166_v52 = vrot.slane %v146_v34, %v597_v19  ;;  %v202_v57 = vrot.slane %v182_v39, %v607_v25  ;;  %v206_v58 = vrot.slane %v186_v40, %v607_v25  ;;  %v540_v34 = vmov 1983009808  }
  0x11   :  { %253 = vperm.xlu1 %500, %v20_v5   ;;  %v210_v59 = vrot.slane %v190_v41, %v607_v25  ;;  %v214_v60 = vrot.slane %v194_v42, %v607_v25 }
  0x14   :  { %504 = vset.pattern.permute.xlu0 %v536_v7 }
  0x15   :  { %502 = vset.pattern.permute.xlu1 %v535_v6  ;;  %365 = vperm.xlu0 %504, %v20_v5  }
  0x16   :  { %309 = vperm.xlu1 %502, %v20_v5  }
  0x19   :  { %507 = vset.pattern.permute.xlu0 %v537_v8 }
  0x1a   :  { %503 = vset.pattern.permute.xlu1 %v538_v9 }
  0x1b   :  { %337 = vperm.xlu1 %503, %v20_v5  }
  0x1f   :  { %505 = vset.pattern.permute.xlu1 %v539_v10 }
  0x20   :  { %393 = vperm.xlu1 %505, %v20_v5  }
  0x24   :  { %506 = vset.pattern.permute.xlu1 %v537_v8 }
  0x25   :  { %421 = vperm.xlu1 %506, %v20_v5  }
  0x81   :  { %v81_v47 = vpop.permute.xlu1 %80  ;;  %v31_v48 = vpop.permute.xlu0 %30 }
  0x82   :  { %v71_v53 = vmul.f32 %v58_v35, %v31_v48  ;;  %v72_v54 = vmul.f32 %v62_v36, %v31_v48  ;;  %v73_v55 = vmul.f32 %v66_v37, %v31_v48  ;;  %v74_v56 = vmul.f32 %v70_v38, %v31_v48 }
  0x83   :  { %v119_v61 = vmul.f32 %v106_v43, %v81_v47  ;;  %v120_v62 = vmul.f32 %v110_v44, %v81_v47  ;;  %v121_v63 = vmul.f32 %v114_v45, %v81_v47  ;;  %v122_v0 = vmul.f32 %v118_v46, %v81_v47 }
  0x84   :  { %v640_v35 = vunpack.c.l.s4 %v540_v34 }
  0x85   :  { %v24_v1 = vpop.permute.xlu0 %23 }
  0x86   :  { %v75_v2 = vadd.f32 %v71_v53, %v24_v1  ;;  %v76_v3 = vadd.f32 %v72_v54, %v24_v1  ;;  %v77_v4 = vadd.f32 %v73_v55, %v24_v1  ;;  %v78_v5 = vadd.f32 %v74_v56, %v24_v1  ;;  %v129_v6 = vpop.permute.xlu1 %128 }
  0x87   :  { %v167_v7 = vmul.f32 %v154_v49, %v129_v6  ;;  %v168_v8 = vmul.f32 %v158_v50, %v129_v6  ;;  %v169_v9 = vmul.f32 %v162_v51, %v129_v6  ;;  %v170_v10 = vmul.f32 %v166_v52, %v129_v6 }
  0x88   :  { %v123_v11 = vadd.f32 %v119_v61, %v75_v2  ;;  %v124_v17 = vadd.f32 %v120_v62, %v76_v3  ;;  %v125_v18 = vadd.f32 %v121_v63, %v77_v4  ;;  %v126_v21 = vadd.f32 %v122_v0, %v78_v5 }
  0x89   :  { %v456_v45 = vunpack.c.0.s8 %v640_v35 }
  0x8a   :  { %v171_v22 = vadd.f32 %v167_v7, %v123_v11  ;;  %v172_v23 = vadd.f32 %v168_v8, %v124_v17  ;;  %v173_v24 = vadd.f32 %v169_v9, %v125_v18  ;;  %v174_v27 = vadd.f32 %v170_v10, %v126_v21  ;;  %v177_v28 = vpop.permute.xlu0 %176 }
  0x8b   :  { %v215_v29 = vmul.f32 %v202_v57, %v177_v28  ;;  %v216_v30 = vmul.f32 %v206_v58, %v177_v28  ;;  %v217_v31 = vmul.f32 %v210_v59, %v177_v28  ;;  %v218_v32 = vmul.f32 %v214_v60, %v177_v28  ;;  %v230_v33 = vpop.permute.xlu1 %229 }
  0x8d   :  { %v219_v36 = vadd.f32 %v215_v29, %v171_v22  ;;  %v220_v37 = vadd.f32 %v216_v30, %v172_v23  ;;  %v221_v38 = vadd.f32 %v217_v31, %v173_v24  ;;  %v222_v39 = vadd.f32 %v218_v32, %v174_v27 }
  0x8f   :  { %v642_v40 = vmax.f32 %v219_v36, 0.0  ;;  %v644_v41 = vmax.f32 %v220_v37, 0.0  ;;  %v646_v42 = vmax.f32 %v221_v38, 0.0  ;;  %v648_v43 = vmax.f32 %v222_v39, 0.0  ;;  %v282_v50 = vpop.permute.xlu0 %281 }
  0x90   :  { %v254_v44 = vpop.permute.xlu1 %253 }
  0x91   :  { %v235_v46 = vrot.slane %v642_v40, %v579_v13  ;;  %v239_v47 = vrot.slane %v644_v41, %v579_v13  ;;  %v243_v48 = vrot.slane %v646_v42, %v579_v13  ;;  %v247_v49 = vrot.slane %v648_v43, %v579_v13 }
  0x92   :  { %v259_v51 = vrot.slane %v642_v40, %v585_v15  ;;  %v263_v52 = vrot.slane %v644_v41, %v585_v15  ;;  %v267_v53 = vrot.slane %v646_v42, %v585_v15  ;;  %v271_v54 = vrot.slane %v648_v43, %v585_v15 }
  0x93   :  { %v248_v55 = vmul.f32 %v235_v46, %v230_v33  ;;  %v249_v56 = vmul.f32 %v239_v47, %v230_v33  ;;  %v250_v57 = vmul.f32 %v243_v48, %v230_v33  ;;  %v251_v58 = vmul.f32 %v247_v49, %v230_v33 }
  0x94   :  { %v272_v59 = vmul.f32 %v259_v51, %v254_v44  ;;  %v273_v60 = vmul.f32 %v263_v52, %v254_v44  ;;  %v274_v13 = vmul.f32 %v267_v53, %v254_v44  ;;  %v275_v61 = vmul.f32 %v271_v54, %v254_v44  ;;  %v366_v10 = vpop.permute.xlu0 %365 }
  0x95   :  { %v287_v62 = vrot.slane %v642_v40, %v597_v19  ;;  %v291_v63 = vrot.slane %v644_v41, %v597_v19  ;;  %v295_v0 = vrot.slane %v646_v42, %v597_v19  ;;  %v299_v15 = vrot.slane %v648_v43, %v597_v19  ;;  %v310_v1 = vpop.permute.xlu1 %309 }
  0x96   :  { %v276_v2 = vadd.f32 %v272_v59, %v248_v55  ;;  %v277_v3 = vadd.f32 %v273_v60, %v249_v56  ;;  %v278_v4 = vadd.f32 %v274_v13, %v250_v57  ;;  %v279_v5 = vadd.f32 %v275_v61, %v251_v58 }
  0x97   :  { %v300_v6 = vmul.f32 %v287_v62, %v282_v50  ;;  %v301_v7 = vmul.f32 %v291_v63, %v282_v50  ;;  %v302_v8 = vmul.f32 %v295_v0, %v282_v50  ;;  %v303_v9 = vmul.f32 %v299_v15, %v282_v50 }
  0x98   :  { %v371_v11 = vrot.slane %v642_v40, %v588_v16  ;;  %v375_v17 = vrot.slane %v644_v41, %v588_v16  ;;  %v379_v18 = vrot.slane %v646_v42, %v588_v16  ;;  %v383_v19 = vrot.slane %v648_v43, %v588_v16 }
  0x99   :  { %v304_v21 = vadd.f32 %v300_v6, %v276_v2  ;;  %v305_v22 = vadd.f32 %v301_v7, %v277_v3  ;;  %v306_v23 = vadd.f32 %v302_v8, %v278_v4  ;;  %v307_v24 = vadd.f32 %v303_v9, %v279_v5 }
  0x9a   :  { %v384_v27 = vmul.f32 %v371_v11, %v366_v10  ;;  %v385_v28 = vmul.f32 %v375_v17, %v366_v10  ;;  %v386_v29 = vmul.f32 %v379_v18, %v366_v10  ;;  %v387_v30 = vmul.f32 %v383_v19, %v366_v10  ;;  %v338_v31 = vpop.permute.xlu1 %337 }
  0x9b   :  { %v315_v32 = vrot.slane %v642_v40, %v607_v25  ;;  %v319_v33 = vrot.slane %v644_v41, %v607_v25  ;;  %v323_v34 = vrot.slane %v646_v42, %v607_v25  ;;  %v327_v16 = vrot.slane %v648_v43, %v607_v25 }
  0x9c   :  { %v343_v36 = vrot.slane %v642_v40, %v582_v14  ;;  %v347_v37 = vrot.slane %v644_v41, %v582_v14  ;;  %v351_v38 = vrot.slane %v646_v42, %v582_v14  ;;  %v355_v39 = vrot.slane %v648_v43, %v582_v14 }
  0x9d   :  { %v328_v44 = vmul.f32 %v315_v32, %v310_v1  ;;  %v329_v46 = vmul.f32 %v319_v33, %v310_v1  ;;  %v330_v47 = vmul.f32 %v323_v34, %v310_v1  ;;  %v331_v48 = vmul.f32 %v327_v16, %v310_v1 }
  0x9e   :  { %v356_v49 = vmul.f32 %v343_v36, %v338_v31  ;;  %v357_v50 = vmul.f32 %v347_v37, %v338_v31  ;;  %v358_v51 = vmul.f32 %v351_v38, %v338_v31  ;;  %v359_v25 = vmul.f32 %v355_v39, %v338_v31 }
  0x9f   :  { %v332_v52 = vadd.f32 %v328_v44, %v304_v21  ;;  %v333_v53 = vadd.f32 %v329_v46, %v305_v22  ;;  %v334_v54 = vadd.f32 %v330_v47, %v306_v23  ;;  %v335_v55 = vadd.f32 %v331_v48, %v307_v24  ;;  %v394_v56 = vpop.permute.xlu1 %393 }
  0xa0   :  { %v399_v57 = vrot.slane %v642_v40, %v600_v20  ;;  %v403_v58 = vrot.slane %v644_v41, %v600_v20  ;;  %v407_v14 = vrot.slane %v646_v42, %v600_v20  ;;  %v411_v59 = vrot.slane %v648_v43, %v600_v20 }
  0xa1   :  { %v360_v60 = vadd.f32 %v356_v49, %v332_v52  ;;  %v361_v13 = vadd.f32 %v357_v50, %v333_v53  ;;  %v362_v61 = vadd.f32 %v358_v51, %v334_v54  ;;  %v363_v62 = vadd.f32 %v359_v25, %v335_v55 }
  0xa2   :  { %v412_v63 = vmul.f32 %v399_v57, %v394_v56  ;;  %v413_v0 = vmul.f32 %v403_v58, %v394_v56  ;;  %v414_v15 = vmul.f32 %v407_v14, %v394_v56  ;;  %v415_v1 = vmul.f32 %v411_v59, %v394_v56 }
  0xa3   :  { %v388_v2 = vadd.f32 %v384_v27, %v360_v60  ;;  %v389_v3 = vadd.f32 %v385_v28, %v361_v13  ;;  %v390_v4 = vadd.f32 %v386_v29, %v362_v61  ;;  %v391_v5 = vadd.f32 %v387_v30, %v363_v62 }
  0xa4   :  { %v422_v6 = vpop.permute.xlu1 %421  ;;  %v427_v7 = vrot.slane %v642_v40, %v610_v26  ;;  %v431_v8 = vrot.slane %v644_v41, %v610_v26  ;;  %v435_v20 = vrot.slane %v646_v42, %v610_v26  ;;  %v439_v9 = vrot.slane %v648_v43, %v610_v26 }
  0xa5   :  { %v416_v10 = vadd.f32 %v412_v63, %v388_v2  ;;  %v417_v11 = vadd.f32 %v413_v0, %v389_v3  ;;  %v418_v17 = vadd.f32 %v414_v15, %v390_v4  ;;  %v419_v18 = vadd.f32 %v415_v1, %v391_v5 }
  0xa6   :  { %v440_v19 = vmul.f32 %v427_v7, %v422_v6  ;;  %v441_v21 = vmul.f32 %v431_v8, %v422_v6  ;;  %v442_v22 = vmul.f32 %v435_v20, %v422_v6  ;;  %v443_v23 = vmul.f32 %v439_v9, %v422_v6 }
  0xa7   :  { %v459_v40 = vsub.s32 %v456_v45, %v576_v12 }
  0xa8   :  { %v444_v24 = vadd.f32 %v440_v19, %v416_v10  ;;  %v445_v41 = vadd.f32 %v441_v21, %v417_v11  ;;  %v446_v27 = vadd.f32 %v442_v22, %v418_v17  ;;  %v447_v28 = vadd.f32 %v443_v23, %v419_v18 }
  0xaa   :  { %v452_v42 = vcombine.low %v444_v24, %v445_v41  ;;  %v453_v29 = vcombine.low %v446_v27, %v447_v28 }
  0xac   :  { %v460_v26 = vrot.slane %v452_v42, %v459_v40  ;;  %v467_v43 = vrot.slane %v453_v29, %v459_v40 }
  0xae   :  { %v468_v30 = vcombine.low %v460_v26, %v467_v43 }
  0xb0   :  { %470 = vst [vmem:[#allocation2] sm:$0xff] %v468_v30 }
  0xb1   :  { %519 = shalt.err (!%p516_p4)
}
  0xb2   :  { %s520_s26 = scalar_lea.hbm %s734_s4, 128 }
  0xb3   :  { %p521_p5 = scmp.ne.s32.totalorder %s734_s4, %s520_s26  ;;  %p524_p6 = scmp.lt.u32.totalorder %s520_s26, %s734_s4 }
  0xb5   :  { %p526_p7 = pnand %p524_p6, %p521_p5 }
  0xb7   :  { %529 = shalt.err (!%p526_p7)
}
  0xb8   :  { %480 = dma.vmem_to_hbm [thread:$0]  %s478_s22, 128, %s734_s4, [#allocation3]  }
  0xb9   :  { %530 = dma.done.wait [#allocation3], 128  }
  0xba   :  { %531 = vsyncadd [#allocation3], 4294967168 }
  0xbb   :  { %484 = vsyncpa [#allocation3], 1 }

</bundles_post_ra>
